<compile_context>
chip_gen: v7x
topology: tpu7x:2x2x1
jax: 0.10.0
libtpu: 0.0.40
codegen_flags: <defaults>
</compile_context>

<pallas_src>
import functools
import math

import jax
import jax.numpy as jnp
from jax.experimental import pallas as pl
from jax.experimental.pallas import tpu as pltpu


# ----------------------------------------------------------------------------
# Fused kernel: per-head QKV projection -> causal softmax attention -> fused
# output projection accumulation. One grid point = (batch b, query block qb).
# ----------------------------------------------------------------------------
def _fused_cross_attn_kernel(x_kv_ref, x_q_ref, w_kv_ref, b_kv_ref,
                             w_q_ref, b_q_ref, w_p_ref, b_p_ref, o_ref,
                             *, n_head):
    x_kv = x_kv_ref[0]                       # (Tk, C)       bf16
    x_q = x_q_ref[0]                         # (block_q, C)  bf16
    Tk = x_kv.shape[0]
    bq = x_q.shape[0]
    hs = w_q_ref.shape[2]
    C = n_head * hs

    # Causal tril mask, offset by this query block's position along Tq.
    # (query position i attends to key positions j <= i, counted from 0 — same
    #  convention as the reference buffer mask[:Tq, :Tk].)
    q0 = pl.program_id(1) * bq
    row = jax.lax.broadcasted_iota(jnp.int32, (bq, Tk), 0) + q0
    col = jax.lax.broadcasted_iota(jnp.int32, (bq, Tk), 1)
    causal = col <= row

    dn = (((1,), (1,)), ((), ()))            # contract last dims: q @ k^T, no transpose

    def head_body(h, acc):
        # Per-head projections from head-major weight blocks (lane-aligned tiles,
        # no slicing of activations along the lane axis). K and V fused in one
        # matmul; 1/sqrt(hs) was pre-folded into w_q / b_q at prep time.
        kv = jnp.dot(x_kv, w_kv_ref[h],
                     preferred_element_type=jnp.float32) + b_kv_ref[h]    # (Tk, 2*hs) f32
        qh = jnp.dot(x_q, w_q_ref[h],
                     preferred_element_type=jnp.float32) + b_q_ref[h]     # (bq, hs)   f32
        kh = kv[:, :hs]
        vh = kv[:, hs:]

        att = jax.lax.dot_general(qh.astype(jnp.bfloat16), kh.astype(jnp.bfloat16),
                                  dn, preferred_element_type=jnp.float32)  # (bq, Tk)
        att = jnp.where(causal, att, -1e10)

        # softmax over keys — all f32 VPU/EUP math; divide -> EUP reciprocal.
        att = att - jnp.max(att, axis=-1, keepdims=True)
        p = jnp.exp(att)
        p = p * pl.reciprocal(jnp.sum(p, axis=-1, keepdims=True), approx=True)

        head = jnp.dot(p.astype(jnp.bfloat16), vh.astype(jnp.bfloat16),
                       preferred_element_type=jnp.float32)                 # (bq, hs)

        # Fused output projection: accumulate this head's contribution directly.
        # No lane-axis head concat; only one head's tensors are live at a time.
        return acc + jnp.dot(head.astype(jnp.bfloat16), w_p_ref[h],
                             preferred_element_type=jnp.float32)           # (bq, C)

    acc0 = jnp.zeros((bq, C), jnp.float32)
    acc = jax.lax.fori_loop(0, n_head, head_body, acc0, unroll=n_head <= 8)

    o_ref[0] = acc + b_p_ref[...]


# ----------------------------------------------------------------------------
# One-time parameter preparation (NOT in the per-call path):
#   * nn.Linear (out,in) weights transposed to (in,out)
#   * K/V fused, head-major split, 1/sqrt(hs) folded into Wq/bq
#   * matmul operands cast to bf16, biases kept f32
# ----------------------------------------------------------------------------
def prepare_params(params, n_head):
    C = params["w_q"].shape[0]
    hs = C // n_head
    scale = 1.0 / math.sqrt(hs)

    def head_major_out(w):                   # (out,in) -> (H, Cin, hs)
        return w.T.reshape(C, n_head, hs).transpose(1, 0, 2)

    w_k = head_major_out(params["w_k"])
    w_v = head_major_out(params["w_v"])
    w_kv = jnp.concatenate([w_k, w_v], axis=-1)                    # (H, C, 2*hs)
    b_kv = jnp.concatenate([params["b_k"].reshape(n_head, 1, hs),
                            params["b_v"].reshape(n_head, 1, hs)], axis=-1)

    w_q = head_major_out(params["w_q"]) * scale                    # (H, C, hs), scaled
    b_q = (params["b_q"] * scale).reshape(n_head, 1, hs)

    w_p = params["w_proj"].T.reshape(n_head, hs, C)                # (H, hs, C)
    b_p = params["b_proj"].reshape(1, C)

    return {
        "w_kv": w_kv.astype(jnp.bfloat16), "b_kv": b_kv.astype(jnp.float32),
        "w_q": w_q.astype(jnp.bfloat16), "b_q": b_q.astype(jnp.float32),
        "w_p": w_p.astype(jnp.bfloat16), "b_p": b_p.astype(jnp.float32),
    }


# ----------------------------------------------------------------------------
# Module forward: single pallas_call, grid = (batch, query blocks)
# ----------------------------------------------------------------------------
def causal_cross_attention(x_kv, x_q, prep, n_head, block_q=None):
    Bk, Tk, Ck = x_kv.shape
    Bq, Tq, C = x_q.shape
    assert Ck == C and C % n_head == 0
    assert Bk == Bq or Bk == 1 or Bq == 1
    B = max(Bk, Bq)
    hs = C // n_head

    if block_q is None:
        block_q = 128 if (Tq % 128 == 0) else Tq
    assert Tq % block_q == 0
    n_qb = Tq // block_q

    # bf16 activations: native MXU dtype, halves HBM->VMEM DMA bytes.
    x_kv_b = x_kv.astype(jnp.bfloat16)
    x_q_b = x_q.astype(jnp.bfloat16)

    # Fold batch broadcast into the index_map: when a side has batch 1, every grid
    # step reads the same HBM block (no materialized broadcast).
    kv_map = (lambda b, qb: (0, 0, 0)) if Bk == 1 else (lambda b, qb: (b, 0, 0))
    q_map = (lambda b, qb: (0, qb, 0)) if Bq == 1 else (lambda b, qb: (b, qb, 0))

    kernel = functools.partial(_fused_cross_attn_kernel, n_head=n_head)

    return pl.pallas_call(
        kernel,
        out_shape=jax.ShapeDtypeStruct((B, Tq, C), jnp.float32),
        grid=(B, n_qb),
        in_specs=[
            pl.BlockSpec((1, Tk, C), kv_map),
            pl.BlockSpec((1, block_q, C), q_map),
            pl.BlockSpec((n_head, C, 2 * hs), lambda b, qb: (0, 0, 0)),
            pl.BlockSpec((n_head, 1, 2 * hs), lambda b, qb: (0, 0, 0)),
            pl.BlockSpec((n_head, C, hs), lambda b, qb: (0, 0, 0)),
            pl.BlockSpec((n_head, 1, hs), lambda b, qb: (0, 0, 0)),
            pl.BlockSpec((n_head, hs, C), lambda b, qb: (0, 0, 0)),
            pl.BlockSpec((1, C), lambda b, qb: (0, 0)),
        ],
        out_specs=pl.BlockSpec((1, block_q, C), lambda b, qb: (b, qb, 0)),
        compiler_params=pltpu.CompilerParams(
            dimension_semantics=("parallel", "parallel")),
    )(x_kv_b, x_q_b, prep["w_kv"], prep["b_kv"], prep["w_q"], prep["b_q"],
      prep["w_p"], prep["b_p"])


# ----------------------------------------------------------------------------
# Pure-JAX f32 reference (faithful port of the PyTorch module, incl. batch broadcast)
# ----------------------------------------------------------------------------
def reference_forward(x_kv, x_q, params, n_head):
    Bk, Tk, C = x_kv.shape
    Bq, Tq, _ = x_q.shape
    B = max(Bk, Bq)
    hs = C // n_head

    def lin(x, w, b):
        return jnp.einsum("btc,oc->bto", x, w) + b

    k = lin(x_kv, params["w_k"], params["b_k"]).reshape(Bk, Tk, n_head, hs).transpose(0, 2, 1, 3)
    q = lin(x_q, params["w_q"], params["b_q"]).reshape(Bq, Tq, n_head, hs).transpose(0, 2, 1, 3)
    v = lin(x_kv, params["w_v"], params["b_v"]).reshape(Bk, Tk, n_head, hs).transpose(0, 2, 1, 3)

    k = jnp.broadcast_to(k, (B, n_head, Tk, hs))
    q = jnp.broadcast_to(q, (B, n_head, Tq, hs))
    v = jnp.broadcast_to(v, (B, n_head, Tk, hs))

    att = jnp.einsum("bhqd,bhkd->bhqk", q, k) * (1.0 / math.sqrt(hs))
    mask = jnp.tril(jnp.ones((Tq, Tk)))
    att = jnp.where(mask == 0, -1e10, att)
    att = jax.nn.softmax(att, axis=-1)
    y = jnp.einsum("bhqk,bhkd->bhqd", att, v)
    y = y.transpose(0, 2, 1, 3).reshape(B, Tq, C)
    return jnp.einsum("btc,oc->bto", y, params["w_proj"]) + params["b_proj"]


# ----------------------------------------------------------------------------
# Deterministic parameter init (nn.Linear default: U(-1/sqrt(in), 1/sqrt(in)))
# ----------------------------------------------------------------------------
def init_params(key, n_embd):
    bound = 1.0 / math.sqrt(n_embd)
    names = ["k", "q", "v", "proj"]
    keys = jax.random.split(key, 2 * len(names))
    params = {}
    for i, n in enumerate(names):
        params[f"w_{n}"] = jax.random.uniform(
            keys[2 * i], (n_embd, n_embd), jnp.float32, -bound, bound)
        params[f"b_{n}"] = jax.random.uniform(
            keys[2 * i + 1], (n_embd,), jnp.float32, -bound, bound)
    return params


if __name__ == "__main__":
    # config: n_embd=32, n_head=4, block_size=8, attn_pdrop=resid_pdrop=0 (eval)
    n_embd, n_head = 32, 4
    Bk, Bq, Tk, Tq = 1, 2, 8, 8

    root = jax.random.PRNGKey(0)
    k_par, k_kv, k_q = jax.random.split(root, 3)
    params = init_params(k_par, n_embd)
    prep = prepare_params(params, n_head)     # once at init time, not per call

    x_kv = jax.random.normal(k_kv, (Bk, Tk, n_embd), jnp.float32)
    x_q = jax.random.normal(k_q, (Bq, Tq, n_embd), jnp.float32)

    out = causal_cross_attention(x_kv, x_q, prep, n_head)
    out = jax.block_until_ready(out)

    ref = reference_forward(x_kv, x_q, params, n_head)
    assert out.shape == (max(Bk, Bq), Tq, n_embd), out.shape
    # bf16 MXU operands + approx reciprocal -> relaxed tolerance vs the f32 reference.
    assert jnp.allclose(out, ref, rtol=3e-2, atol=3e-2), \
        f"max abs err = {jnp.max(jnp.abs(out - ref))}"

    print("KERNEL_OK")
</pallas_src>

<mosaic_0001>
module attributes {stable_mosaic.version = 11 : i64} {
  func.func @_fused_cross_attn_kernel(%arg0: i32, %arg1: i32, %arg2: memref<1x8x32xbf16, #tpu.memory_space<vmem>>, %arg3: memref<1x8x32xbf16, #tpu.memory_space<vmem>>, %arg4: memref<4x32x16xbf16, #tpu.memory_space<vmem>>, %arg5: memref<4x1x16xf32, #tpu.memory_space<vmem>>, %arg6: memref<4x32x8xbf16, #tpu.memory_space<vmem>>, %arg7: memref<4x1x8xf32, #tpu.memory_space<vmem>>, %arg8: memref<4x8x32xbf16, #tpu.memory_space<vmem>>, %arg9: memref<1x32xf32, #tpu.memory_space<vmem>>, %arg10: memref<1x8x32xf32, #tpu.memory_space<vmem>>) attributes {dimension_semantics = [#tpu.dimension_semantics<parallel>, #tpu.dimension_semantics<parallel>], iteration_bounds = array<i64: 2, 1>, scalar_prefetch = 0 : i64, scratch_operands = 0 : i64, tpu.core_type = #tpu.core_type<tc>, window_params = [{pipeline_mode = #tpu.pipeline_mode<synchronous>, transform_indices = @transform_0, window_bounds = array<i64: 1, 8, 32>}, {transform_indices = @transform_1, window_bounds = array<i64: 1, 8, 32>}, {pipeline_mode = #tpu.pipeline_mode<synchronous>, transform_indices = @transform_2, window_bounds = array<i64: 4, 32, 16>}, {pipeline_mode = #tpu.pipeline_mode<synchronous>, transform_indices = @transform_3, window_bounds = array<i64: 4, 1, 16>}, {pipeline_mode = #tpu.pipeline_mode<synchronous>, transform_indices = @transform_4, window_bounds = array<i64: 4, 32, 8>}, {pipeline_mode = #tpu.pipeline_mode<synchronous>, transform_indices = @transform_5, window_bounds = array<i64: 4, 1, 8>}, {pipeline_mode = #tpu.pipeline_mode<synchronous>, transform_indices = @transform_6, window_bounds = array<i64: 4, 8, 32>}, {pipeline_mode = #tpu.pipeline_mode<synchronous>, transform_indices = @transform_7, window_bounds = array<i64: 1, 32>}, {transform_indices = @transform_8, window_bounds = array<i64: 1, 8, 32>}]} {
    %c0 = arith.constant 0 : index
    %c0_0 = arith.constant 0 : index
    %c0_1 = arith.constant 0 : index
    %0 = vector.load %arg2[%c0, %c0_0, %c0_1] : memref<1x8x32xbf16, #tpu.memory_space<vmem>>, vector<1x8x32xbf16>
    %1 = vector.shape_cast %0 : vector<1x8x32xbf16> to vector<8x32xbf16>
    %c0_2 = arith.constant 0 : index
    %c0_3 = arith.constant 0 : index
    %c0_4 = arith.constant 0 : index
    %2 = vector.load %arg3[%c0_2, %c0_3, %c0_4] : memref<1x8x32xbf16, #tpu.memory_space<vmem>>, vector<1x8x32xbf16>
    %3 = vector.shape_cast %2 : vector<1x8x32xbf16> to vector<8x32xbf16>
    %c8_i32 = arith.constant 8 : i32
    %4 = arith.muli %arg1, %c8_i32 : i32
    %5 = tpu.iota {dimensions = array<i32: 0>} : vector<8x8xi32>
    %6 = vector.broadcast %4 : i32 to vector<8x8xi32>
    %7 = arith.addi %5, %6 : vector<8x8xi32>
    %8 = tpu.iota {dimensions = array<i32: 1>} : vector<8x8xi32>
    %9 = arith.cmpi sle, %8, %7 : vector<8x8xi32>
    %cst = arith.constant 0.000000e+00 : f32
    %10 = vector.broadcast %cst : f32 to vector<8x32xf32>
    %c0_i32 = arith.constant 0 : i32
    %11 = arith.index_cast %c0_i32 : i32 to index
    %c0_5 = arith.constant 0 : index
    %c0_6 = arith.constant 0 : index
    %12 = vector.load %arg4[%11, %c0_5, %c0_6] : memref<4x32x16xbf16, #tpu.memory_space<vmem>>, vector<1x32x16xbf16>
    %13 = vector.shape_cast %12 : vector<1x32x16xbf16> to vector<32x16xbf16>
    %cst_7 = arith.constant dense<0.000000e+00> : vector<8x16xf32>
    %14 = tpu.matmul %1, %13, %cst_7 {dimension_numbers = #tpu.dot_dimension_numbers<[1], [0], [0], [1], [0, 0, 1, 1], [], []>} : vector<8x32xbf16>, vector<32x16xbf16>, vector<8x16xf32> -> vector<8x16xf32>
    %15 = arith.index_cast %c0_i32 : i32 to index
    %c0_8 = arith.constant 0 : index
    %c0_9 = arith.constant 0 : index
    %16 = vector.load %arg5[%15, %c0_8, %c0_9] : memref<4x1x16xf32, #tpu.memory_space<vmem>>, vector<1x1x16xf32>
    %17 = vector.shape_cast %16 : vector<1x1x16xf32> to vector<1x16xf32>
    %18 = vector.broadcast %17 : vector<1x16xf32> to vector<8x16xf32>
    %19 = arith.addf %14, %18 : vector<8x16xf32>
    %20 = arith.index_cast %c0_i32 : i32 to index
    %c0_10 = arith.constant 0 : index
    %c0_11 = arith.constant 0 : index
    %21 = vector.load %arg6[%20, %c0_10, %c0_11] : memref<4x32x8xbf16, #tpu.memory_space<vmem>>, vector<1x32x8xbf16>
    %22 = vector.shape_cast %21 : vector<1x32x8xbf16> to vector<32x8xbf16>
    %cst_12 = arith.constant dense<0.000000e+00> : vector<8x8xf32>
    %23 = tpu.matmul %3, %22, %cst_12 {dimension_numbers = #tpu.dot_dimension_numbers<[1], [0], [0], [1], [0, 0, 1, 1], [], []>} : vector<8x32xbf16>, vector<32x8xbf16>, vector<8x8xf32> -> vector<8x8xf32>
    %24 = arith.index_cast %c0_i32 : i32 to index
    %c0_13 = arith.constant 0 : index
    %c0_14 = arith.constant 0 : index
    %25 = vector.load %arg7[%24, %c0_13, %c0_14] : memref<4x1x8xf32, #tpu.memory_space<vmem>>, vector<1x1x8xf32>
    %26 = vector.shape_cast %25 : vector<1x1x8xf32> to vector<1x8xf32>
    %27 = vector.broadcast %26 : vector<1x8xf32> to vector<8x8xf32>
    %28 = arith.addf %23, %27 : vector<8x8xf32>
    %29 = vector.extract_strided_slice %19 {offsets = [0, 0], sizes = [8, 8], strides = [1, 1]} : vector<8x16xf32> to vector<8x8xf32>
    %30 = vector.extract_strided_slice %19 {offsets = [0, 8], sizes = [8, 8], strides = [1, 1]} : vector<8x16xf32> to vector<8x8xf32>
    %31 = arith.truncf %28 : vector<8x8xf32> to vector<8x8xbf16>
    %32 = arith.truncf %29 : vector<8x8xf32> to vector<8x8xbf16>
    %cst_15 = arith.constant dense<0.000000e+00> : vector<8x8xf32>
    %33 = tpu.matmul %31, %32, %cst_15 {dimension_numbers = #tpu.dot_dimension_numbers<[1], [1], [0], [0], [0, 0, 1, 0], [], []>} : vector<8x8xbf16>, vector<8x8xbf16>, vector<8x8xf32> -> vector<8x8xf32>
    %cst_16 = arith.constant -1.000000e+10 : f32
    %34 = vector.broadcast %cst_16 : f32 to vector<8x8xf32>
    %35 = arith.select %9, %33, %34 : vector<8x8xi1>, vector<8x8xf32>
    %cst_17 = arith.constant dense<0xFF800000> : vector<8xf32>
    %36 = vector.multi_reduction <maximumf>, %35, %cst_17 [1] : vector<8x8xf32> to vector<8xf32>
    %37 = vector.shape_cast %36 : vector<8xf32> to vector<8x1xf32>
    %38 = vector.broadcast %37 : vector<8x1xf32> to vector<8x8xf32>
    %39 = arith.subf %35, %38 : vector<8x8xf32>
    %40 = math.exp %39 : vector<8x8xf32>
    %cst_18 = arith.constant dense<0.000000e+00> : vector<8xf32>
    %41 = vector.multi_reduction <add>, %40, %cst_18 [1] : vector<8x8xf32> to vector<8xf32>
    %42 = vector.shape_cast %41 : vector<8xf32> to vector<8x1xf32>
    %43 = tpu.reciprocal %42 {approx = true} : vector<8x1xf32> -> vector<8x1xf32>
    %44 = vector.broadcast %43 : vector<8x1xf32> to vector<8x8xf32>
    %45 = arith.mulf %40, %44 : vector<8x8xf32>
    %46 = arith.truncf %45 : vector<8x8xf32> to vector<8x8xbf16>
    %47 = arith.truncf %30 : vector<8x8xf32> to vector<8x8xbf16>
    %cst_19 = arith.constant dense<0.000000e+00> : vector<8x8xf32>
    %48 = tpu.matmul %46, %47, %cst_19 {dimension_numbers = #tpu.dot_dimension_numbers<[1], [0], [0], [1], [0, 0, 1, 1], [], []>} : vector<8x8xbf16>, vector<8x8xbf16>, vector<8x8xf32> -> vector<8x8xf32>
    %49 = arith.truncf %48 : vector<8x8xf32> to vector<8x8xbf16>
    %50 = arith.index_cast %c0_i32 : i32 to index
    %c0_20 = arith.constant 0 : index
    %c0_21 = arith.constant 0 : index
    %51 = vector.load %arg8[%50, %c0_20, %c0_21] : memref<4x8x32xbf16, #tpu.memory_space<vmem>>, vector<1x8x32xbf16>
    %52 = vector.shape_cast %51 : vector<1x8x32xbf16> to vector<8x32xbf16>
    %cst_22 = arith.constant dense<0.000000e+00> : vector<8x32xf32>
    %53 = tpu.matmul %49, %52, %cst_22 {dimension_numbers = #tpu.dot_dimension_numbers<[1], [0], [0], [1], [0, 0, 1, 1], [], []>} : vector<8x8xbf16>, vector<8x32xbf16>, vector<8x32xf32> -> vector<8x32xf32>
    %54 = arith.addf %10, %53 : vector<8x32xf32>
    %c1_i32 = arith.constant 1 : i32
    %55 = arith.index_cast %c1_i32 : i32 to index
    %c0_23 = arith.constant 0 : index
    %c0_24 = arith.constant 0 : index
    %56 = vector.load %arg4[%55, %c0_23, %c0_24] : memref<4x32x16xbf16, #tpu.memory_space<vmem>>, vector<1x32x16xbf16>
    %57 = vector.shape_cast %56 : vector<1x32x16xbf16> to vector<32x16xbf16>
    %cst_25 = arith.constant dense<0.000000e+00> : vector<8x16xf32>
    %58 = tpu.matmul %1, %57, %cst_25 {dimension_numbers = #tpu.dot_dimension_numbers<[1], [0], [0], [1], [0, 0, 1, 1], [], []>} : vector<8x32xbf16>, vector<32x16xbf16>, vector<8x16xf32> -> vector<8x16xf32>
    %59 = arith.index_cast %c1_i32 : i32 to index
    %c0_26 = arith.constant 0 : index
    %c0_27 = arith.constant 0 : index
    %60 = vector.load %arg5[%59, %c0_26, %c0_27] : memref<4x1x16xf32, #tpu.memory_space<vmem>>, vector<1x1x16xf32>
    %61 = vector.shape_cast %60 : vector<1x1x16xf32> to vector<1x16xf32>
    %62 = vector.broadcast %61 : vector<1x16xf32> to vector<8x16xf32>
    %63 = arith.addf %58, %62 : vector<8x16xf32>
    %64 = arith.index_cast %c1_i32 : i32 to index
    %c0_28 = arith.constant 0 : index
    %c0_29 = arith.constant 0 : index
    %65 = vector.load %arg6[%64, %c0_28, %c0_29] : memref<4x32x8xbf16, #tpu.memory_space<vmem>>, vector<1x32x8xbf16>
    %66 = vector.shape_cast %65 : vector<1x32x8xbf16> to vector<32x8xbf16>
    %cst_30 = arith.constant dense<0.000000e+00> : vector<8x8xf32>
    %67 = tpu.matmul %3, %66, %cst_30 {dimension_numbers = #tpu.dot_dimension_numbers<[1], [0], [0], [1], [0, 0, 1, 1], [], []>} : vector<8x32xbf16>, vector<32x8xbf16>, vector<8x8xf32> -> vector<8x8xf32>
    %68 = arith.index_cast %c1_i32 : i32 to index
    %c0_31 = arith.constant 0 : index
    %c0_32 = arith.constant 0 : index
    %69 = vector.load %arg7[%68, %c0_31, %c0_32] : memref<4x1x8xf32, #tpu.memory_space<vmem>>, vector<1x1x8xf32>
    %70 = vector.shape_cast %69 : vector<1x1x8xf32> to vector<1x8xf32>
    %71 = vector.broadcast %70 : vector<1x8xf32> to vector<8x8xf32>
    %72 = arith.addf %67, %71 : vector<8x8xf32>
    %73 = vector.extract_strided_slice %63 {offsets = [0, 0], sizes = [8, 8], strides = [1, 1]} : vector<8x16xf32> to vector<8x8xf32>
    %74 = vector.extract_strided_slice %63 {offsets = [0, 8], sizes = [8, 8], strides = [1, 1]} : vector<8x16xf32> to vector<8x8xf32>
    %75 = arith.truncf %72 : vector<8x8xf32> to vector<8x8xbf16>
    %76 = arith.truncf %73 : vector<8x8xf32> to vector<8x8xbf16>
    %cst_33 = arith.constant dense<0.000000e+00> : vector<8x8xf32>
    %77 = tpu.matmul %75, %76, %cst_33 {dimension_numbers = #tpu.dot_dimension_numbers<[1], [1], [0], [0], [0, 0, 1, 0], [], []>} : vector<8x8xbf16>, vector<8x8xbf16>, vector<8x8xf32> -> vector<8x8xf32>
    %cst_34 = arith.constant -1.000000e+10 : f32
    %78 = vector.broadcast %cst_34 : f32 to vector<8x8xf32>
    %79 = arith.select %9, %77, %78 : vector<8x8xi1>, vector<8x8xf32>
    %cst_35 = arith.constant dense<0xFF800000> : vector<8xf32>
    %80 = vector.multi_reduction <maximumf>, %79, %cst_35 [1] : vector<8x8xf32> to vector<8xf32>
    %81 = vector.shape_cast %80 : vector<8xf32> to vector<8x1xf32>
    %82 = vector.broadcast %81 : vector<8x1xf32> to vector<8x8xf32>
    %83 = arith.subf %79, %82 : vector<8x8xf32>
    %84 = math.exp %83 : vector<8x8xf32>
    %cst_36 = arith.constant dense<0.000000e+00> : vector<8xf32>
    %85 = vector.multi_reduction <add>, %84, %cst_36 [1] : vector<8x8xf32> to vector<8xf32>
    %86 = vector.shape_cast %85 : vector<8xf32> to vector<8x1xf32>
    %87 = tpu.reciprocal %86 {approx = true} : vector<8x1xf32> -> vector<8x1xf32>
    %88 = vector.broadcast %87 : vector<8x1xf32> to vector<8x8xf32>
    %89 = arith.mulf %84, %88 : vector<8x8xf32>
    %90 = arith.truncf %89 : vector<8x8xf32> to vector<8x8xbf16>
    %91 = arith.truncf %74 : vector<8x8xf32> to vector<8x8xbf16>
    %cst_37 = arith.constant dense<0.000000e+00> : vector<8x8xf32>
    %92 = tpu.matmul %90, %91, %cst_37 {dimension_numbers = #tpu.dot_dimension_numbers<[1], [0], [0], [1], [0, 0, 1, 1], [], []>} : vector<8x8xbf16>, vector<8x8xbf16>, vector<8x8xf32> -> vector<8x8xf32>
    %93 = arith.truncf %92 : vector<8x8xf32> to vector<8x8xbf16>
    %94 = arith.index_cast %c1_i32 : i32 to index
    %c0_38 = arith.constant 0 : index
    %c0_39 = arith.constant 0 : index
    %95 = vector.load %arg8[%94, %c0_38, %c0_39] : memref<4x8x32xbf16, #tpu.memory_space<vmem>>, vector<1x8x32xbf16>
    %96 = vector.shape_cast %95 : vector<1x8x32xbf16> to vector<8x32xbf16>
    %cst_40 = arith.constant dense<0.000000e+00> : vector<8x32xf32>
    %97 = tpu.matmul %93, %96, %cst_40 {dimension_numbers = #tpu.dot_dimension_numbers<[1], [0], [0], [1], [0, 0, 1, 1], [], []>} : vector<8x8xbf16>, vector<8x32xbf16>, vector<8x32xf32> -> vector<8x32xf32>
    %98 = arith.addf %54, %97 : vector<8x32xf32>
    %c2_i32 = arith.constant 2 : i32
    %99 = arith.index_cast %c2_i32 : i32 to index
    %c0_41 = arith.constant 0 : index
    %c0_42 = arith.constant 0 : index
    %100 = vector.load %arg4[%99, %c0_41, %c0_42] : memref<4x32x16xbf16, #tpu.memory_space<vmem>>, vector<1x32x16xbf16>
    %101 = vector.shape_cast %100 : vector<1x32x16xbf16> to vector<32x16xbf16>
    %cst_43 = arith.constant dense<0.000000e+00> : vector<8x16xf32>
    %102 = tpu.matmul %1, %101, %cst_43 {dimension_numbers = #tpu.dot_dimension_numbers<[1], [0], [0], [1], [0, 0, 1, 1], [], []>} : vector<8x32xbf16>, vector<32x16xbf16>, vector<8x16xf32> -> vector<8x16xf32>
    %103 = arith.index_cast %c2_i32 : i32 to index
    %c0_44 = arith.constant 0 : index
    %c0_45 = arith.constant 0 : index
    %104 = vector.load %arg5[%103, %c0_44, %c0_45] : memref<4x1x16xf32, #tpu.memory_space<vmem>>, vector<1x1x16xf32>
    %105 = vector.shape_cast %104 : vector<1x1x16xf32> to vector<1x16xf32>
    %106 = vector.broadcast %105 : vector<1x16xf32> to vector<8x16xf32>
    %107 = arith.addf %102, %106 : vector<8x16xf32>
    %108 = arith.index_cast %c2_i32 : i32 to index
    %c0_46 = arith.constant 0 : index
    %c0_47 = arith.constant 0 : index
    %109 = vector.load %arg6[%108, %c0_46, %c0_47] : memref<4x32x8xbf16, #tpu.memory_space<vmem>>, vector<1x32x8xbf16>
    %110 = vector.shape_cast %109 : vector<1x32x8xbf16> to vector<32x8xbf16>
    %cst_48 = arith.constant dense<0.000000e+00> : vector<8x8xf32>
    %111 = tpu.matmul %3, %110, %cst_48 {dimension_numbers = #tpu.dot_dimension_numbers<[1], [0], [0], [1], [0, 0, 1, 1], [], []>} : vector<8x32xbf16>, vector<32x8xbf16>, vector<8x8xf32> -> vector<8x8xf32>
    %112 = arith.index_cast %c2_i32 : i32 to index
    %c0_49 = arith.constant 0 : index
    %c0_50 = arith.constant 0 : index
    %113 = vector.load %arg7[%112, %c0_49, %c0_50] : memref<4x1x8xf32, #tpu.memory_space<vmem>>, vector<1x1x8xf32>
    %114 = vector.shape_cast %113 : vector<1x1x8xf32> to vector<1x8xf32>
    %115 = vector.broadcast %114 : vector<1x8xf32> to vector<8x8xf32>
    %116 = arith.addf %111, %115 : vector<8x8xf32>
    %117 = vector.extract_strided_slice %107 {offsets = [0, 0], sizes = [8, 8], strides = [1, 1]} : vector<8x16xf32> to vector<8x8xf32>
    %118 = vector.extract_strided_slice %107 {offsets = [0, 8], sizes = [8, 8], strides = [1, 1]} : vector<8x16xf32> to vector<8x8xf32>
    %119 = arith.truncf %116 : vector<8x8xf32> to vector<8x8xbf16>
    %120 = arith.truncf %117 : vector<8x8xf32> to vector<8x8xbf16>
    %cst_51 = arith.constant dense<0.000000e+00> : vector<8x8xf32>
    %121 = tpu.matmul %119, %120, %cst_51 {dimension_numbers = #tpu.dot_dimension_numbers<[1], [1], [0], [0], [0, 0, 1, 0], [], []>} : vector<8x8xbf16>, vector<8x8xbf16>, vector<8x8xf32> -> vector<8x8xf32>
    %cst_52 = arith.constant -1.000000e+10 : f32
    %122 = vector.broadcast %cst_52 : f32 to vector<8x8xf32>
    %123 = arith.select %9, %121, %122 : vector<8x8xi1>, vector<8x8xf32>
    %cst_53 = arith.constant dense<0xFF800000> : vector<8xf32>
    %124 = vector.multi_reduction <maximumf>, %123, %cst_53 [1] : vector<8x8xf32> to vector<8xf32>
    %125 = vector.shape_cast %124 : vector<8xf32> to vector<8x1xf32>
    %126 = vector.broadcast %125 : vector<8x1xf32> to vector<8x8xf32>
    %127 = arith.subf %123, %126 : vector<8x8xf32>
    %128 = math.exp %127 : vector<8x8xf32>
    %cst_54 = arith.constant dense<0.000000e+00> : vector<8xf32>
    %129 = vector.multi_reduction <add>, %128, %cst_54 [1] : vector<8x8xf32> to vector<8xf32>
    %130 = vector.shape_cast %129 : vector<8xf32> to vector<8x1xf32>
    %131 = tpu.reciprocal %130 {approx = true} : vector<8x1xf32> -> vector<8x1xf32>
    %132 = vector.broadcast %131 : vector<8x1xf32> to vector<8x8xf32>
    %133 = arith.mulf %128, %132 : vector<8x8xf32>
    %134 = arith.truncf %133 : vector<8x8xf32> to vector<8x8xbf16>
    %135 = arith.truncf %118 : vector<8x8xf32> to vector<8x8xbf16>
    %cst_55 = arith.constant dense<0.000000e+00> : vector<8x8xf32>
    %136 = tpu.matmul %134, %135, %cst_55 {dimension_numbers = #tpu.dot_dimension_numbers<[1], [0], [0], [1], [0, 0, 1, 1], [], []>} : vector<8x8xbf16>, vector<8x8xbf16>, vector<8x8xf32> -> vector<8x8xf32>
    %137 = arith.truncf %136 : vector<8x8xf32> to vector<8x8xbf16>
    %138 = arith.index_cast %c2_i32 : i32 to index
    %c0_56 = arith.constant 0 : index
    %c0_57 = arith.constant 0 : index
    %139 = vector.load %arg8[%138, %c0_56, %c0_57] : memref<4x8x32xbf16, #tpu.memory_space<vmem>>, vector<1x8x32xbf16>
    %140 = vector.shape_cast %139 : vector<1x8x32xbf16> to vector<8x32xbf16>
    %cst_58 = arith.constant dense<0.000000e+00> : vector<8x32xf32>
    %141 = tpu.matmul %137, %140, %cst_58 {dimension_numbers = #tpu.dot_dimension_numbers<[1], [0], [0], [1], [0, 0, 1, 1], [], []>} : vector<8x8xbf16>, vector<8x32xbf16>, vector<8x32xf32> -> vector<8x32xf32>
    %142 = arith.addf %98, %141 : vector<8x32xf32>
    %c3_i32 = arith.constant 3 : i32
    %143 = arith.index_cast %c3_i32 : i32 to index
    %c0_59 = arith.constant 0 : index
    %c0_60 = arith.constant 0 : index
    %144 = vector.load %arg4[%143, %c0_59, %c0_60] : memref<4x32x16xbf16, #tpu.memory_space<vmem>>, vector<1x32x16xbf16>
    %145 = vector.shape_cast %144 : vector<1x32x16xbf16> to vector<32x16xbf16>
    %cst_61 = arith.constant dense<0.000000e+00> : vector<8x16xf32>
    %146 = tpu.matmul %1, %145, %cst_61 {dimension_numbers = #tpu.dot_dimension_numbers<[1], [0], [0], [1], [0, 0, 1, 1], [], []>} : vector<8x32xbf16>, vector<32x16xbf16>, vector<8x16xf32> -> vector<8x16xf32>
    %147 = arith.index_cast %c3_i32 : i32 to index
    %c0_62 = arith.constant 0 : index
    %c0_63 = arith.constant 0 : index
    %148 = vector.load %arg5[%147, %c0_62, %c0_63] : memref<4x1x16xf32, #tpu.memory_space<vmem>>, vector<1x1x16xf32>
    %149 = vector.shape_cast %148 : vector<1x1x16xf32> to vector<1x16xf32>
    %150 = vector.broadcast %149 : vector<1x16xf32> to vector<8x16xf32>
    %151 = arith.addf %146, %150 : vector<8x16xf32>
    %152 = arith.index_cast %c3_i32 : i32 to index
    %c0_64 = arith.constant 0 : index
    %c0_65 = arith.constant 0 : index
    %153 = vector.load %arg6[%152, %c0_64, %c0_65] : memref<4x32x8xbf16, #tpu.memory_space<vmem>>, vector<1x32x8xbf16>
    %154 = vector.shape_cast %153 : vector<1x32x8xbf16> to vector<32x8xbf16>
    %cst_66 = arith.constant dense<0.000000e+00> : vector<8x8xf32>
    %155 = tpu.matmul %3, %154, %cst_66 {dimension_numbers = #tpu.dot_dimension_numbers<[1], [0], [0], [1], [0, 0, 1, 1], [], []>} : vector<8x32xbf16>, vector<32x8xbf16>, vector<8x8xf32> -> vector<8x8xf32>
    %156 = arith.index_cast %c3_i32 : i32 to index
    %c0_67 = arith.constant 0 : index
    %c0_68 = arith.constant 0 : index
    %157 = vector.load %arg7[%156, %c0_67, %c0_68] : memref<4x1x8xf32, #tpu.memory_space<vmem>>, vector<1x1x8xf32>
    %158 = vector.shape_cast %157 : vector<1x1x8xf32> to vector<1x8xf32>
    %159 = vector.broadcast %158 : vector<1x8xf32> to vector<8x8xf32>
    %160 = arith.addf %155, %159 : vector<8x8xf32>
    %161 = vector.extract_strided_slice %151 {offsets = [0, 0], sizes = [8, 8], strides = [1, 1]} : vector<8x16xf32> to vector<8x8xf32>
    %162 = vector.extract_strided_slice %151 {offsets = [0, 8], sizes = [8, 8], strides = [1, 1]} : vector<8x16xf32> to vector<8x8xf32>
    %163 = arith.truncf %160 : vector<8x8xf32> to vector<8x8xbf16>
    %164 = arith.truncf %161 : vector<8x8xf32> to vector<8x8xbf16>
    %cst_69 = arith.constant dense<0.000000e+00> : vector<8x8xf32>
    %165 = tpu.matmul %163, %164, %cst_69 {dimension_numbers = #tpu.dot_dimension_numbers<[1], [1], [0], [0], [0, 0, 1, 0], [], []>} : vector<8x8xbf16>, vector<8x8xbf16>, vector<8x8xf32> -> vector<8x8xf32>
    %cst_70 = arith.constant -1.000000e+10 : f32
    %166 = vector.broadcast %cst_70 : f32 to vector<8x8xf32>
    %167 = arith.select %9, %165, %166 : vector<8x8xi1>, vector<8x8xf32>
    %cst_71 = arith.constant dense<0xFF800000> : vector<8xf32>
    %168 = vector.multi_reduction <maximumf>, %167, %cst_71 [1] : vector<8x8xf32> to vector<8xf32>
    %169 = vector.shape_cast %168 : vector<8xf32> to vector<8x1xf32>
    %170 = vector.broadcast %169 : vector<8x1xf32> to vector<8x8xf32>
    %171 = arith.subf %167, %170 : vector<8x8xf32>
    %172 = math.exp %171 : vector<8x8xf32>
    %cst_72 = arith.constant dense<0.000000e+00> : vector<8xf32>
    %173 = vector.multi_reduction <add>, %172, %cst_72 [1] : vector<8x8xf32> to vector<8xf32>
    %174 = vector.shape_cast %173 : vector<8xf32> to vector<8x1xf32>
    %175 = tpu.reciprocal %174 {approx = true} : vector<8x1xf32> -> vector<8x1xf32>
    %176 = vector.broadcast %175 : vector<8x1xf32> to vector<8x8xf32>
    %177 = arith.mulf %172, %176 : vector<8x8xf32>
    %178 = arith.truncf %177 : vector<8x8xf32> to vector<8x8xbf16>
    %179 = arith.truncf %162 : vector<8x8xf32> to vector<8x8xbf16>
    %cst_73 = arith.constant dense<0.000000e+00> : vector<8x8xf32>
    %180 = tpu.matmul %178, %179, %cst_73 {dimension_numbers = #tpu.dot_dimension_numbers<[1], [0], [0], [1], [0, 0, 1, 1], [], []>} : vector<8x8xbf16>, vector<8x8xbf16>, vector<8x8xf32> -> vector<8x8xf32>
    %181 = arith.truncf %180 : vector<8x8xf32> to vector<8x8xbf16>
    %182 = arith.index_cast %c3_i32 : i32 to index
    %c0_74 = arith.constant 0 : index
    %c0_75 = arith.constant 0 : index
    %183 = vector.load %arg8[%182, %c0_74, %c0_75] : memref<4x8x32xbf16, #tpu.memory_space<vmem>>, vector<1x8x32xbf16>
    %184 = vector.shape_cast %183 : vector<1x8x32xbf16> to vector<8x32xbf16>
    %cst_76 = arith.constant dense<0.000000e+00> : vector<8x32xf32>
    %185 = tpu.matmul %181, %184, %cst_76 {dimension_numbers = #tpu.dot_dimension_numbers<[1], [0], [0], [1], [0, 0, 1, 1], [], []>} : vector<8x8xbf16>, vector<8x32xbf16>, vector<8x32xf32> -> vector<8x32xf32>
    %186 = arith.addf %142, %185 : vector<8x32xf32>
    %c4_i32 = arith.constant 4 : i32
    %c0_77 = arith.constant 0 : index
    %c0_78 = arith.constant 0 : index
    %187 = vector.load %arg9[%c0_77, %c0_78] : memref<1x32xf32, #tpu.memory_space<vmem>>, vector<1x32xf32>
    %188 = vector.broadcast %187 : vector<1x32xf32> to vector<8x32xf32>
    %189 = arith.addf %186, %188 : vector<8x32xf32>
    %c0_79 = arith.constant 0 : index
    %c0_80 = arith.constant 0 : index
    %c0_81 = arith.constant 0 : index
    %190 = vector.load %arg10[%c0_79, %c0_80, %c0_81] : memref<1x8x32xf32, #tpu.memory_space<vmem>>, vector<1x8x32xf32>
    %191 = vector.shape_cast %190 : vector<1x8x32xf32> to vector<8x32xf32>
    %192 = vector.shape_cast %189 : vector<8x32xf32> to vector<1x8x32xf32>
    tpu.vector_store %arg10[%c0_79, %c0_80, %c0_81], %192 {strides = array<i32>} : memref<1x8x32xf32, #tpu.memory_space<vmem>>, vector<1x8x32xf32>,
    return
  }
  func.func @transform_0(%arg0: i32, %arg1: i32) -> (i32, i32, i32) {
    %c0_i32 = arith.constant 0 : i32
    %c0_i32_0 = arith.constant 0 : i32
    %c0_i32_1 = arith.constant 0 : i32
    %c0_i32_2 = arith.constant 0 : i32
    return %c0_i32, %c0_i32_0, %c0_i32_1 : i32, i32, i32
  }
  func.func @transform_1(%arg0: i32, %arg1: i32) -> (i32, i32, i32) {
    %c0_i32 = arith.constant 0 : i32
    %c0_i32_0 = arith.constant 0 : i32
    return %arg0, %arg1, %c0_i32 : i32, i32, i32
  }
  func.func @transform_2(%arg0: i32, %arg1: i32) -> (i32, i32, i32) {
    %c0_i32 = arith.constant 0 : i32
    %c0_i32_0 = arith.constant 0 : i32
    %c0_i32_1 = arith.constant 0 : i32
    %c0_i32_2 = arith.constant 0 : i32
    return %c0_i32, %c0_i32_0, %c0_i32_1 : i32, i32, i32
  }
  func.func @transform_3(%arg0: i32, %arg1: i32) -> (i32, i32, i32) {
    %c0_i32 = arith.constant 0 : i32
    %c0_i32_0 = arith.constant 0 : i32
    %c0_i32_1 = arith.constant 0 : i32
    %c0_i32_2 = arith.constant 0 : i32
    return %c0_i32, %c0_i32_0, %c0_i32_1 : i32, i32, i32
  }
  func.func @transform_4(%arg0: i32, %arg1: i32) -> (i32, i32, i32) {
    %c0_i32 = arith.constant 0 : i32
    %c0_i32_0 = arith.constant 0 : i32
    %c0_i32_1 = arith.constant 0 : i32
    %c0_i32_2 = arith.constant 0 : i32
    return %c0_i32, %c0_i32_0, %c0_i32_1 : i32, i32, i32
  }
  func.func @transform_5(%arg0: i32, %arg1: i32) -> (i32, i32, i32) {
    %c0_i32 = arith.constant 0 : i32
    %c0_i32_0 = arith.constant 0 : i32
    %c0_i32_1 = arith.constant 0 : i32
    %c0_i32_2 = arith.constant 0 : i32
    return %c0_i32, %c0_i32_0, %c0_i32_1 : i32, i32, i32
  }
  func.func @transform_6(%arg0: i32, %arg1: i32) -> (i32, i32, i32) {
    %c0_i32 = arith.constant 0 : i32
    %c0_i32_0 = arith.constant 0 : i32
    %c0_i32_1 = arith.constant 0 : i32
    %c0_i32_2 = arith.constant 0 : i32
    return %c0_i32, %c0_i32_0, %c0_i32_1 : i32, i32, i32
  }
  func.func @transform_7(%arg0: i32, %arg1: i32) -> (i32, i32) {
    %c0_i32 = arith.constant 0 : i32
    %c0_i32_0 = arith.constant 0 : i32
    %c0_i32_1 = arith.constant 0 : i32
    return %c0_i32, %c0_i32_0 : i32, i32
  }
  func.func @transform_8(%arg0: i32, %arg1: i32) -> (i32, i32, i32) {
    %c0_i32 = arith.constant 0 : i32
    %c0_i32_0 = arith.constant 0 : i32
    return %arg0, %arg1, %c0_i32 : i32, i32, i32
  }
}

</mosaic_0001>

<bundles_post_ra>
// kernel: tpu_custom_call.1
= control target key start
LH: loop header
LB: loop body
LE: loop exit
PB: predicated region body
PF: predicated region fallthrough
CT: control target
= control target key end

     0   :  { %13 = vsyncpa [#allocation3], 0  ;;  %s2434_s0 = inlined_call_operand.vmem [shape: bf16[1,8,32], index: 0, kind: input, shape index: {}]   ;;  %s2435_s1 = inlined_call_operand.vmem [shape: bf16[2,8,32], index: 1, kind: input, shape index: {}]   ;;  %s2436_s2 = inlined_call_operand.vmem [shape: bf16[4,32,16], index: 2, kind: input, shape index: {}]   ;;  %s2437_s3 = inlined_call_operand.vmem [shape: f32[4,1,16], index: 3, kind: input, shape index: {}]   ;;  %s2438_s4 = inlined_call_operand.vmem [shape: bf16[4,32,8], index: 4, kind: input, shape index: {}]   ;;  %s2439_s5 = inlined_call_operand.vmem [shape: f32[4,1,8], index: 5, kind: input, shape index: {}]   ;;  %s2440_s6 = inlined_call_operand.vmem [shape: bf16[4,8,32], index: 6, kind: input, shape index: {}]   ;;  %s2441_s7 = inlined_call_operand.vmem [shape: f32[1,32], index: 7, kind: input, shape index: {}]   ;;  %s2442_s8 = inlined_call_operand.hbm [shape: f32[2,8,32], index: 8, kind: output, shape index: {}]  }
   0x1   :  { %15 = vsyncpa [#allocation3 + $0x1], 0  ;;  %s2086_s27 = smov 0   ;;  %s2088_s28 = smov 0  }
   0x2   :  { %s2090_s29 = smov 0   ;;  %s2092_s30 = smov 0  }
   0x3   :  { %s2094_s9 = smov 0   ;;  %s2096_s10 = smov 0  }
   0x4 LB: > { %s1594_s11 = sadd.s32 4294967295, %s2035_s10   ;;  %s1595_s12 = sadd.s32 4294967294, %s2035_s10   ;;  %s2035_s10 = sphi %s2096_s10, %s21_s10   ;;  %s2031_s9 = sphi %s2094_s9, %s2449_s9   ;;  %s2027_s30 = sphi %s2092_s30, %s2448_s30   ;;  %s2023_s29 = sphi %s2090_s29, %s2447_s29   ;;  %s2019_s28 = sphi %s2088_s28, %s2446_s28   ;;  %s2015_s27 = sphi %s2086_s27, %s2445_s27  }
   0x5   : > { %s33_s13 = sadd.s32 1, %s2031_s9  ;;  %s217_s14 = sadd.s32 1, %s2023_s29 }
   0x6   : > { %p35_p0 = scmp.ge.s32.totalorder %s33_s13, 2  ;;  %p227_p1 = scmp.ne.s32.totalorder %s2023_s29, %s2019_s28 }
   0x7   : > { %p228_p2 = scmp.eq.s32.totalorder %s1594_s11, 1  ;;  %p233_p3 = scmp.ne.s32.totalorder %s2019_s28, %s2015_s27 }
   0x8   : > { %s2451_s13 = smov (%p35_p0, %s33_s13), 0  ;;  %p234_p5 = scmp.eq.s32.totalorder %s1595_s12, 1 }
   0x9   : > { %p2126_p4 = por %p228_p2, %p227_p1  ;;  %s212_s16 = ssub.s32 %s2031_s9, %s2451_s13 }
   0xa   : > { %p1598_p6 = scmp.ge.s32.totalorder %s2035_s10, 1  ;;  %p215_p7 = scmp.eq.s32.totalorder %s212_s16, 0 }
   0xb   : > { %p2133_p8 = por %p234_p5, %p233_p3  ;;  %p283_p9 = scmp.lt.s32.totalorder %s2035_s10, 3 }
   0xc   : > { %s2139_s18 = scalar_select %p215_p7, %s2023_s29, %s217_s14  }
   0xd   : > { %p284_p10 = pnand %p1598_p6, %p283_p9 }
   0xe   : > { %v1925_v0 = vld [vmem:[%s2436_s2] sm:$0xff] (!%p284_p10)   ;;  %v2037_v1 = vmov (!%p284_p10), 0.0   ;;  %v1926_v2 = vld [vmem:[%s2436_s2 + $0x8] sm:$0xff] (!%p284_p10)   ;;  %vm2038_vm0 = vmmov (!%p284_p10), 0   ;;  %p319_p11 = scmp.lt.s32.totalorder (!%p284_p10), %s2027_s30, 1  ;;  %vm360_vm1 = vcmask (!%p284_p10), 261120   ;;  %v330_v24 = vlaneseq (!%p284_p10) }
   0xf   : > { %287 = sbr.rel (%p284_p10) target bundleno = 3915 (0xf4b), region = 52  ;;  %1731 = vmatprep.subr.bf16.mxu0 (!%p284_p10), %v2037_v1  ;;  %1739 = vmatprep.subr.bf16.mxu1 (!%p284_p10), %v2037_v1  ;;  %v1927_v3 = vld [vmem:[%s2438_s4] sm:$0xff] (!%p284_p10)   ;;  %v1928_v5 = vld [vmem:[%s2438_s4 + $0x8] sm:$0xff] (!%p284_p10)   ;;  %vm472_vm2 = vcmask (!%p284_p10), 64512   ;;  %s2039_s26 = smov (!%p284_p10), 120   ;;  %vm538_vm3 = vcmask (!%p284_p10), 1043456  }
  0x10   : > { %1732 = vmatpush3.bf16.msra.mxu0 (!%p284_p10), %v1925_v0  ;;  %1735 = vmatprep.mubr.msk.bf16.mxu0 (!%p284_p10), %vm2038_vm0, %v2037_v1  ;;  %v2160_v4 = vld [vmem:[%s2434_s0] sm:$0xf] (!%p284_p10)  ;;  %v2197_v25 = vshrl.u32 (!%p284_p10), %v330_v24, 7  ;;  %v2199_v26 = vand.u32 (!%p284_p10), 127, %v330_v24  ;;  %v1929_v38 = vld [vmem:[%s2436_s2 + $0x10] sm:$0xff] (!%p284_p10)   ;;  %v1930_v39 = vld [vmem:[%s2436_s2 + $0x18] sm:$0xff] (!%p284_p10)  }
  0x11   : > { %1733 = vmatprep.subr.bf16.mxu0 (!%p284_p10), %v2037_v1  ;;  %1743 = vmatprep.mubr.msk.bf16.mxu1 (!%p284_p10), %vm2038_vm0, %v2037_v1  ;;  %v1601_v7 = vld [vmem:[%s2437_s3] ss:$0 sm:$0xff] (!%p284_p10)  ;;  %v1931_v43 = vld [vmem:[%s2438_s4 + $0x10] sm:$0xff] (!%p284_p10)   ;;  %v1932_v45 = vld [vmem:[%s2438_s4 + $0x18] sm:$0xff] (!%p284_p10)   ;;  %s2040_s25 = smov (!%p284_p10), [#allocation2]  }
  0x12   : > { %1740 = vmatpush3.bf16.msra.mxu1 (!%p284_p10), %v1927_v3  ;;  %v1605_v12 = vld [vmem:[%s2439_s5] ss:$0 sm:$0xff] (!%p284_p10)  ;;  %vm336_vm4 = vcmp.le.s32.totalorder (!%p284_p10), %v2199_v26, %v2197_v25  ;;  %v1616_v46 = vld [vmem:[%s2437_s3 + $0x1] ss:$0 sm:$0xff] (!%p284_p10) }
  0x13   : > { %1741 = vmatprep.subr.bf16.mxu1 (!%p284_p10), %v2037_v1  ;;  %v1625_v58 = vld [vmem:[%s2439_s5 + $0x1] ss:$0 sm:$0xff] (!%p284_p10) }
  0x14   : > { %1734 = vmatpush3.bf16.msra.mxu0 (!%p284_p10), %v1926_v2 }
  0x15   : > { %1747 = vmatprep.subr.bf16.mxu0 (!%p284_p10), %v2037_v1 }
  0x16   : > { %s320_s14 = scalar_select %p319_p11, %s2027_s30, 1  ;;  %1742 = vmatpush3.bf16.msra.mxu1 %v1928_v5 }
  0x17   : > { %1736 = vmatmul.mubr.msk.bf16.vlgmr.msra.gmra.mrb[0].mxu0 %vm360_vm1, %v2160_v4  ;;  %1753 = vmatprep.subr.bf16.mxu1 %v2037_v1 }
  0x18   : > { %s1600_s16 = sshll.u32 %s320_s14, 2  ;;  %1749 = vmatprep.mubr.msk.bf16.mxu0 %vm2038_vm0, %v2037_v1 }
  0x19   : > { %s325_s21 = scalar_lea.vmem %s2435_s1, %s1600_s16  ;;  %s1680_s16 = sshll.u32 %s2027_s30, 7 }
  0x1a   : > { %v2175_v6 = vld [vmem:[%s325_s21] sm:$0xf]  ;;  %s2386_s23 = scalar_lea.hbm %s2442_s8, %s1680_s16 }
  0x1b   : > { %1744 = vmatmul.mubr.msk.bf16.vlgmr.msra.gmra.mrb[0].mxu1 %vm360_vm1, %v2175_v6 }
  0x1c   : > { %1755 = vmatprep.mubr.msk.bf16.mxu1 %vm2038_vm0, %v2037_v1 }
  0xea   : > { %v398_v8 = vpop.f32.mrb[0].mxu0 }
  0xeb   : > { %v399_v9 = vadd.f32 %v1601_v7, %v398_v8  ;;  %v1737_v10 = vpop.f32.mrb[1].mxu0 }
  0xec   : > { %v401_v11 = vpop.f32.mrb[2].mxu0 }
  0xed   : > { %v471_v14 = vpack.c.bf16 %v399_v9, %v399_v9  ;;  %v1738_v15 = vpop.f32.mrb[3].mxu0 }
  0xee   : > { %v464_v13 = vpop.f32.mrb[0].mxu1  ;;  %v1631_v15 = vld [vmem:[%s2440_s6 + $0x4] sm:$0xf] }
  0xef   : > { %v1745_v16 = vpop.f32.mrb[1].mxu1  ;;  %v477_v18 = vsel %vm472_vm2, %v471_v14, 0  ;;  %533 = vrot.lane.b32.xlu1 %v471_v14, %s2039_s26  ;;  %v465_v19 = vadd.f32 %v1605_v12, %v464_v13 }
  0xf0   : > { %v467_v17 = vpop.f32.mrb[2].mxu1  ;;  %1748 = vmatpush3.bf16.xpose.msra.mxu0 %v477_v18  ;;  %v831_v16 = vsel %vm538_vm3, %v1631_v15, 0 }
  0xf1   : > { %v1746_v20 = vpop.f32.mrb[3].mxu1  ;;  %1759 = vmatprep.subr.bf16.mxu0 %v2037_v1  ;;  %v470_v21 = vpack.c.bf16 %v465_v19, %v465_v19 }
  0xf7   : > { %1750 = vmatmul.mubr.msk.bf16.vlgmr.msra.gmra.mrb[4].mxu0 %vm472_vm2, %v470_v21  ;;  %v583_v21 = vld [vmem:[%s2440_s6] sm:$0xf] }
  0xf8   : > { %1763 = vmatprep.mubr.msk.bf16.mxu0 %vm2038_vm0, %v2037_v1  ;;  %1760 = vmatpush3.bf16.msra.mxu0 %v1929_v38  ;;  %v877_v24 = vsel %vm538_vm3, %v583_v21, 0 }
  0xf9   : > { %1761 = vmatprep.subr.bf16.mxu0 %v2037_v1 }
  0xfc   : > { %1762 = vmatpush3.bf16.msra.mxu0 %v1930_v39 }
  0xfd   : > { %1775 = vmatprep.subr.bf16.mxu0 %v2037_v1 }
  0xff   : > { %1764 = vmatmul.mubr.msk.bf16.vlgmr.msra.gmra.mrb[8].mxu0 %vm360_vm1, %v2160_v4 }
 0x100   : > { %1777 = vmatprep.mubr.msk.bf16.mxu0 %vm2038_vm0, %v2037_v1 }
 0x161   : > { %v534_v22 = vpop.permute.xlu1 %533 }
 0x162   : > { %v540_v23 = vsel %vm538_vm3, %v534_v22, 0 }
 0x163   : > { %1754 = vmatpush3.bf16.msra.mxu1 %v540_v23 }
 0x164   : > { %1767 = vmatprep.subr.bf16.mxu1 %v2037_v1 }
 0x1ca   : > { %v513_v27 = vpop.f32.mrb[4].mxu0 }
 0x1cb   : > { %v519_v28 = vsel %vm336_vm4, %v513_v27, -1e+10  ;;  %v1751_v29 = vpop.f32.mrb[5].mxu0 }
 0x1cc   : > { %v516_v30 = vpop.f32.mrb[6].mxu0  ;;  %v520_v31 = vsel %vm472_vm2, %v519_v28, -inf  ;;  %v1936_v29 = vld [vmem:[%s2438_s4 + $0x28] sm:$0xff]  }
 0x1cd   : > { %521 = vmax.xlane.f32.xlu0 %v520_v31  ;;  %v1752_v32 = vpop.f32.mrb[7].mxu0  ;;  %v1933_v31 = vld [vmem:[%s2436_s2 + $0x20] sm:$0xff]  }
 0x1d2   : > { %v643_v47 = vpop.f32.mrb[8].mxu0 }
 0x1d3   : > { %v644_v48 = vadd.f32 %v1616_v46, %v643_v47  ;;  %v1765_v49 = vpop.f32.mrb[9].mxu0 }
 0x1d4   : > { %v646_v50 = vpop.f32.mrb[10].mxu0 }
 0x1d5   : > { %v715_v51 = vpack.c.bf16 %v644_v48, %v644_v48  ;;  %v1766_v52 = vpop.f32.mrb[11].mxu0  ;;  %v1639_v50 = vld [vmem:[%s2437_s3 + $0x2] ss:$0 sm:$0xff] }
 0x1d7   : > { %v720_v53 = vsel %vm472_vm2, %v715_v51, 0 }
 0x1d8   : > { %1776 = vmatpush3.bf16.xpose.msra.mxu0 %v720_v53 }
 0x1d9   : > { %1787 = vmatprep.subr.bf16.mxu0 %v2037_v1 }
 0x25a   : > { %v522_v33 = vpop.xlane.xlu0 %521 }
 0x25b   : > { %v523_v34 = vsub.f32 %v519_v28, %v522_v33  ;;  %v1935_v28 = vld [vmem:[%s2438_s4 + $0x20] sm:$0xff]  }
 0x25d   : > { %v524_v35 = vmul.f32 1.442695, %v523_v34 }
 0x25f   : > { %1941 = vpow2.f32 %v524_v35 }
 0x269   : > { %v1942_v36 = vpop.eup %1941 }
 0x26a   : > { %v526_v37 = vsel %vm472_vm2, %v1942_v36, 0.0 }
 0x26b   : > { %527 = vadd.xlane.f32.xlu0 %v526_v37 }
 0x2f8   : > { %v528_v40 = vpop.xlane.xlu0 %527 }
 0x2f9   : > { %1943 = vrcp.f32 %v528_v40 }
 0x303   : > { %v1944_v41 = vpop.eup %1943 }
 0x304   : > { %v530_v42 = vmul.f32 %v1944_v41, %v1942_v36  ;;  %v1934_v36 = vld [vmem:[%s2436_s2 + $0x28] sm:$0xff]  }
 0x306   : > { %v531_v44 = vpack.c.bf16 %v530_v42, %v530_v42 }
 0x308   : > { %1756 = vmatmul.mubr.msk.bf16.vlgmr.msra.gmra.mrb[4].mxu1 %vm472_vm2, %v531_v44 }
 0x309   : > { %1768 = vmatpush3.bf16.msra.mxu1 %v1931_v43  ;;  %1771 = vmatprep.mubr.msk.bf16.mxu1 %vm2038_vm0, %v2037_v1 }
 0x30a   : > { %1769 = vmatprep.subr.bf16.mxu1 %v2037_v1 }
 0x30d   : > { %1770 = vmatpush3.bf16.msra.mxu1 %v1932_v45 }
 0x30e   : > { %1781 = vmatprep.subr.bf16.mxu1 %v2037_v1 }
 0x310   : > { %1772 = vmatmul.mubr.msk.bf16.vlgmr.msra.gmra.mrb[8].mxu1 %vm360_vm1, %v2175_v6 }
 0x311   : > { %1783 = vmatprep.mubr.msk.bf16.mxu1 %vm2038_vm0, %v2037_v1 }
 0x3db   : > { %v576_v54 = vpop.f32.mrb[4].mxu1 }
 0x3dc   : > { %v1757_v55 = vpop.f32.mrb[5].mxu1  ;;  %v582_v27 = vpack.c.bf16 %v576_v54, %v576_v54 }
 0x3dd   : > { %v579_v56 = vpop.f32.mrb[6].mxu1  ;;  %v1648_v55 = vld [vmem:[%s2439_s5 + $0x2] ss:$0 sm:$0xff] }
 0x3de   : > { %v1758_v57 = vpop.f32.mrb[7].mxu1 }
 0x3e3   : > { %v708_v59 = vpop.f32.mrb[8].mxu1 }
 0x3e4   : > { %v709_v60 = vadd.f32 %v1625_v58, %v708_v59  ;;  %v1773_v61 = vpop.f32.mrb[9].mxu1 }
 0x3e5   : > { %v711_v62 = vpop.f32.mrb[10].mxu1 }
 0x3e6   : > { %v714_v63 = vpack.c.bf16 %v709_v60, %v709_v60  ;;  %v1774_v0 = vpop.f32.mrb[11].mxu1 }
 0x3e8   : > { %1778 = vmatmul.mubr.msk.bf16.vlgmr.msra.gmra.mrb[12].mxu0 %vm472_vm2, %v714_v63 }
 0x3e9   : > { %1789 = vmatprep.mubr.msk.bf16.mxu0 %vm2038_vm0, %v2037_v1  ;;  %1788 = vmatpush3.bf16.msra.mxu0 %v831_v16 }
 0x3ea   : > { %1799 = vmatprep.subr.bf16.mxu0 %v2037_v1 }
 0x4bb   : > { %v756_v2 = vpop.f32.mrb[12].mxu0 }
 0x4bc   : > { %v762_v3 = vsel %vm336_vm4, %v756_v2, -1e+10  ;;  %v1779_v5 = vpop.f32.mrb[13].mxu0 }
 0x4bd   : > { %v759_v7 = vpop.f32.mrb[14].mxu0  ;;  %v763_v8 = vsel %vm472_vm2, %v762_v3, -inf }
 0x4be   : > { %764 = vmax.xlane.f32.xlu1 %v763_v8  ;;  %v1780_v9 = vpop.f32.mrb[15].mxu0 }
 0x54b   : > { %v765_v10 = vpop.xlane.xlu1 %764 }
 0x54c   : > { %v766_v11 = vsub.f32 %v762_v3, %v765_v10 }
 0x54e   : > { %v767_v12 = vmul.f32 1.442695, %v766_v11  ;;  %v1654_v11 = vld [vmem:[%s2440_s6 + $0x8] sm:$0xf] }
 0x550   : > { %1945 = vpow2.f32 %v767_v12  ;;  %v1166_v12 = vsel %vm538_vm3, %v1654_v11, 0 }
 0x55a   : > { %v1946_v13 = vpop.eup %1945 }
 0x55b   : > { %v769_v14 = vsel %vm472_vm2, %v1946_v13, 0.0 }
 0x55c   : > { %770 = vadd.xlane.f32.xlu0 %v769_v14 }
 0x572   : > { %776 = vrot.lane.b32.xlu0 %v715_v51, %s2039_s26 }
 0x5e9   : > { %v771_v17 = vpop.xlane.xlu0 %770 }
 0x5ea   : > { %1947 = vrcp.f32 %v771_v17 }
 0x5ed   : > { %v777_v18 = vpop.permute.xlu0 %776 }
 0x5ee   : > { %v782_v19 = vsel %vm538_vm3, %v777_v18, 0  ;;  %v1937_v18 = vld [vmem:[%s2436_s2 + $0x30] sm:$0xff]  }
 0x5ef   : > { %1782 = vmatpush3.bf16.msra.mxu1 %v782_v19 }
 0x5f0   : > { %1793 = vmatprep.subr.bf16.mxu1 %v2037_v1 }
 0x5f4   : > { %v1948_v20 = vpop.eup %1947 }
 0x5f5   : > { %v773_v22 = vmul.f32 %v1948_v20, %v1946_v13  ;;  %v1938_v20 = vld [vmem:[%s2436_s2 + $0x38] sm:$0xff]  }
 0x5f7   : > { %v774_v23 = vpack.c.bf16 %v773_v22, %v773_v22  ;;  %v1939_v22 = vld [vmem:[%s2438_s4 + $0x30] sm:$0xff]  }
 0x5f9   : > { %1784 = vmatmul.mubr.msk.bf16.vlgmr.msra.gmra.mrb[12].mxu1 %vm472_vm2, %v774_v23 }
 0x5fa   : > { %1794 = vmatpush3.bf16.msra.mxu1 %v877_v24  ;;  %1795 = vmatprep.mubr.msk.bf16.mxu1 %vm2038_vm0, %v2037_v1 }
 0x5fb   : > { %1807 = vmatprep.subr.bf16.mxu1 %v2037_v1 }
 0x601   : > { %1796 = vmatmul.mubr.msk.bf16.vlgmr.msra.gmra.mrb[16].mxu1 %vm472_vm2, %v582_v27 }
 0x602   : > { %1811 = vmatprep.mubr.msk.bf16.mxu1 %vm2038_vm0, %v2037_v1  ;;  %1808 = vmatpush3.bf16.msra.mxu1 %v1935_v28 }
 0x603   : > { %1809 = vmatprep.subr.bf16.mxu1 %v2037_v1 }
 0x606   : > { %1810 = vmatpush3.bf16.msra.mxu1 %v1936_v29  ;;  %v1940_v29 = vld [vmem:[%s2438_s4 + $0x38] sm:$0xff]  }
 0x607   : > { %1821 = vmatprep.subr.bf16.mxu1 %v2037_v1 }
 0x609   : > { %1812 = vmatmul.mubr.msk.bf16.vlgmr.msra.gmra.mrb[20].mxu1 %vm360_vm1, %v2175_v6 }
 0x60a   : > { %1823 = vmatprep.mubr.msk.bf16.mxu1 %vm2038_vm0, %v2037_v1 }
 0x6cc   : > { %v818_v30 = vpop.f32.mrb[12].mxu1 }
 0x6cd   : > { %v824_v32 = vpack.c.bf16 %v818_v30, %v818_v30  ;;  %v1785_v33 = vpop.f32.mrb[13].mxu1 }
 0x6ce   : > { %v821_v34 = vpop.f32.mrb[14].mxu1 }
 0x6cf   : > { %v1786_v35 = vpop.f32.mrb[15].mxu1  ;;  %1790 = vmatmul.mubr.msk.bf16.vlgmr.msra.gmra.mrb[16].mxu0 %vm472_vm2, %v824_v32 }
 0x6d0   : > { %1800 = vmatpush3.bf16.msra.mxu0 %v1933_v31  ;;  %1803 = vmatprep.mubr.msk.bf16.mxu0 %vm2038_vm0, %v2037_v1 }
 0x6d1   : > { %1801 = vmatprep.subr.bf16.mxu0 %v2037_v1 }
 0x6d4   : > { %v913_v37 = vpop.f32.mrb[16].mxu1  ;;  %1802 = vmatpush3.bf16.msra.mxu0 %v1934_v36 }
 0x6d5   : > { %v1797_v38 = vpop.f32.mrb[17].mxu1  ;;  %1815 = vmatprep.subr.bf16.mxu0 %v2037_v1 }
 0x6d6   : > { %v916_v39 = vpop.f32.mrb[18].mxu1 }
 0x6d7   : > { %v1798_v40 = vpop.f32.mrb[19].mxu1  ;;  %1804 = vmatmul.mubr.msk.bf16.vlgmr.msra.gmra.mrb[20].mxu0 %vm360_vm1, %v2160_v4 }
 0x6d8   : > { %1817 = vmatprep.mubr.msk.bf16.mxu0 %vm2038_vm0, %v2037_v1 }
 0x6dc   : > { %v1043_v41 = vpop.f32.mrb[20].mxu1 }
 0x6dd   : > { %v1813_v42 = vpop.f32.mrb[21].mxu1  ;;  %v1044_v59 = vadd.f32 %v1648_v55, %v1043_v41 }
 0x6de   : > { %v1046_v43 = vpop.f32.mrb[22].mxu1 }
 0x6df   : > { %v1814_v44 = vpop.f32.mrb[23].mxu1  ;;  %v1049_v60 = vpack.c.bf16 %v1044_v59, %v1044_v59 }
 0x7a2   : > { %v867_v45 = vpop.f32.mrb[16].mxu0 }
 0x7a3   : > { %v2297_v46 = vadd.f32 %v913_v37, %v867_v45  ;;  %v1791_v47 = vpop.f32.mrb[17].mxu0 }
 0x7a4   : > { %v870_v48 = vpop.f32.mrb[18].mxu0 }
 0x7a5   : > { %v1792_v49 = vpop.f32.mrb[19].mxu0 }
 0x7aa   : > { %v978_v51 = vpop.f32.mrb[20].mxu0 }
 0x7ab   : > { %v979_v52 = vadd.f32 %v1639_v50, %v978_v51  ;;  %v1805_v53 = vpop.f32.mrb[21].mxu0 }
 0x7ac   : > { %v981_v54 = vpop.f32.mrb[22].mxu0 }
 0x7ad   : > { %v1050_v56 = vpack.c.bf16 %v979_v52, %v979_v52  ;;  %v1806_v57 = vpop.f32.mrb[23].mxu0 }
 0x7af   : > { %v1055_v58 = vsel %vm472_vm2, %v1050_v56, 0 }
 0x7b0   : > { %1816 = vmatpush3.bf16.xpose.msra.mxu0 %v1055_v58 }
 0x7b1   : > { %1827 = vmatprep.subr.bf16.mxu0 %v2037_v1 }
 0x7b7   : > { %1818 = vmatmul.mubr.msk.bf16.vlgmr.msra.gmra.mrb[24].mxu0 %vm472_vm2, %v1049_v60 }
 0x7b8   : > { %1829 = vmatprep.mubr.msk.bf16.mxu0 %vm2038_vm0, %v2037_v1  ;;  %1828 = vmatpush3.bf16.msra.mxu0 %v1166_v12 }
 0x7b9   : > { %1841 = vmatprep.subr.bf16.mxu0 %v2037_v1 }
 0x88a   : > { %v1091_v61 = vpop.f32.mrb[24].mxu0 }
 0x88b   : > { %v1097_v62 = vsel %vm336_vm4, %v1091_v61, -1e+10  ;;  %v1819_v63 = vpop.f32.mrb[25].mxu0 }
 0x88c   : > { %v1094_v0 = vpop.f32.mrb[26].mxu0  ;;  %v1098_v2 = vsel %vm472_vm2, %v1097_v62, -inf }
 0x88d   : > { %1099 = vmax.xlane.f32.xlu0 %v1098_v2  ;;  %v1820_v3 = vpop.f32.mrb[27].mxu0 }
 0x91a   : > { %v1100_v5 = vpop.xlane.xlu0 %1099 }
 0x91b   : > { %v1101_v7 = vsub.f32 %v1097_v62, %v1100_v5 }
 0x91d   : > { %v1102_v8 = vmul.f32 1.442695, %v1101_v7 }
 0x91f   : > { %1949 = vpow2.f32 %v1102_v8 }
 0x929   : > { %v1950_v9 = vpop.eup %1949 }
 0x92a   : > { %v1104_v10 = vsel %vm472_vm2, %v1950_v9, 0.0 }
 0x92b   : > { %1105 = vadd.xlane.f32.xlu1 %v1104_v10 }
 0x93c   : > { %1111 = vrot.lane.b32.xlu1 %v1050_v56, %s2039_s26 }
 0x9b8   : > { %v1106_v13 = vpop.xlane.xlu1 %1105 }
 0x9b9   : > { %1951 = vrcp.f32 %v1106_v13 }
 0x9bc   : > { %v1112_v14 = vpop.permute.xlu1 %1111 }
 0x9bd   : > { %v1117_v15 = vsel %vm538_vm3, %v1112_v14, 0 }
 0x9be   : > { %1822 = vmatpush3.bf16.msra.mxu1 %v1117_v15 }
 0x9bf   : > { %1833 = vmatprep.subr.bf16.mxu1 %v2037_v1 }
 0x9c3   : > { %v1952_v16 = vpop.eup %1951 }
 0x9c4   : > { %v1108_v17 = vmul.f32 %v1952_v16, %v1950_v9  ;;  %v1678_v9 = vld [vmem:[%s2441_s7] ss:$0 sm:$0xff] }
 0x9c6   : > { %v1109_v19 = vpack.c.bf16 %v1108_v17, %v1108_v17 }
 0x9c8   : > { %1824 = vmatmul.mubr.msk.bf16.vlgmr.msra.gmra.mrb[24].mxu1 %vm472_vm2, %v1109_v19 }
 0x9c9   : > { %1834 = vmatpush3.bf16.msra.mxu1 %v1937_v18  ;;  %1837 = vmatprep.mubr.msk.bf16.mxu1 %vm2038_vm0, %v2037_v1 }
 0x9ca   : > { %1835 = vmatprep.subr.bf16.mxu1 %v2037_v1 }
 0x9cd   : > { %1836 = vmatpush3.bf16.msra.mxu1 %v1938_v20 }
 0x9ce   : > { %1849 = vmatprep.subr.bf16.mxu1 %v2037_v1 }
 0x9d0   : > { %1838 = vmatmul.mubr.msk.bf16.vlgmr.msra.gmra.mrb[28].mxu1 %vm360_vm1, %v2160_v4  ;;  %v1661_v4 = vld [vmem:[%s2437_s3 + $0x3] ss:$0 sm:$0xff] }
 0x9d1   : > { %1851 = vmatprep.mubr.msk.bf16.mxu1 %vm2038_vm0, %v2037_v1 }
 0xa9b   : > { %v1153_v21 = vpop.f32.mrb[24].mxu1 }
 0xa9c   : > { %v1159_v23 = vpack.c.bf16 %v1153_v21, %v1153_v21  ;;  %v1825_v24 = vpop.f32.mrb[25].mxu1 }
 0xa9d   : > { %v1156_v27 = vpop.f32.mrb[26].mxu1 }
 0xa9e   : > { %v1826_v28 = vpop.f32.mrb[27].mxu1  ;;  %1830 = vmatmul.mubr.msk.bf16.vlgmr.msra.gmra.mrb[28].mxu0 %vm472_vm2, %v1159_v23 }
 0xa9f   : > { %1842 = vmatpush3.bf16.msra.mxu0 %v1939_v22  ;;  %1845 = vmatprep.mubr.msk.bf16.mxu0 %vm2038_vm0, %v2037_v1 }
 0xaa0   : > { %1843 = vmatprep.subr.bf16.mxu0 %v2037_v1 }
 0xaa3   : > { %1844 = vmatpush3.bf16.msra.mxu0 %v1940_v29  ;;  %v1268_v30 = vpop.f32.mrb[28].mxu1 }
 0xaa4   : > { %v1269_v31 = vadd.f32 %v1661_v4, %v1268_v30  ;;  %v1839_v32 = vpop.f32.mrb[29].mxu1  ;;  %1855 = vmatprep.subr.bf16.mxu0 %v2037_v1 }
 0xaa5   : > { %v1271_v33 = vpop.f32.mrb[30].mxu1 }
 0xaa6   : > { %1846 = vmatmul.mubr.msk.bf16.vlgmr.msra.gmra.mrb[32].mxu0 %vm360_vm1, %v2175_v6  ;;  %v1340_v34 = vpack.c.bf16 %v1269_v31, %v1269_v31  ;;  %v1840_v35 = vpop.f32.mrb[31].mxu1  ;;  %v1670_v6 = vld [vmem:[%s2439_s5 + $0x3] ss:$0 sm:$0xff] }
 0xaa7   : > { %1857 = vmatprep.mubr.msk.bf16.mxu0 %vm2038_vm0, %v2037_v1 }
 0xaa8   : > { %v1345_v36 = vsel %vm472_vm2, %v1340_v34, 0 }
 0xaa9   : > { %1850 = vmatpush3.bf16.xpose.msra.mxu1 %v1345_v36 }
 0xaaa   : > { %1861 = vmatprep.subr.bf16.mxu1 %v2037_v1 }
 0xb71   : > { %v1202_v37 = vpop.f32.mrb[28].mxu0 }
 0xb72   : > { %v1208_v38 = vadd.f32 %v1202_v37, %v2297_v46  ;;  %v1831_v39 = vpop.f32.mrb[29].mxu0 }
 0xb73   : > { %v1205_v40 = vpop.f32.mrb[30].mxu0 }
 0xb74   : > { %v1832_v41 = vpop.f32.mrb[31].mxu0 }
 0xb79   : > { %v1333_v42 = vpop.f32.mrb[32].mxu0 }
 0xb7a   : > { %v1334_v43 = vadd.f32 %v1670_v6, %v1333_v42  ;;  %v1847_v44 = vpop.f32.mrb[33].mxu0 }
 0xb7b   : > { %v1336_v45 = vpop.f32.mrb[34].mxu0 }
 0xb7c   : > { %v1339_v47 = vpack.c.bf16 %v1334_v43, %v1334_v43  ;;  %v1848_v48 = vpop.f32.mrb[35].mxu0 }
 0xb7e   : > { %1852 = vmatmul.mubr.msk.bf16.vlgmr.msra.gmra.mrb[32].mxu1 %vm472_vm2, %v1339_v47 }
 0xb7f   : > { %1863 = vmatprep.mubr.msk.bf16.mxu1 %vm2038_vm0, %v2037_v1  ;;  %v1676_v1 = vld [vmem:[%s2440_s6 + $0xc] sm:$0xf] }
 0xb80   : > { %v1456_v25 = vsel %vm538_vm3, %v1676_v1, 0 }
 0xb81   : > { %1862 = vmatpush3.bf16.msra.mxu1 %v1456_v25 }
 0xc51   : > { %v1381_v49 = vpop.f32.mrb[32].mxu1 }
 0xc52   : > { %v1387_v46 = vsel %vm336_vm4, %v1381_v49, -1e+10  ;;  %v1853_v50 = vpop.f32.mrb[33].mxu1 }
 0xc53   : > { %v1384_v51 = vpop.f32.mrb[34].mxu1  ;;  %v1388_v52 = vsel %vm472_vm2, %v1387_v46, -inf }
 0xc54   : > { %1389 = vmax.xlane.f32.xlu1 %v1388_v52  ;;  %v1854_v53 = vpop.f32.mrb[35].mxu1 }
 0xce1   : > { %v1390_v54 = vpop.xlane.xlu1 %1389 }
 0xce2   : > { %v1391_v55 = vsub.f32 %v1387_v46, %v1390_v54 }
 0xce4   : > { %v1392_v56 = vmul.f32 1.442695, %v1391_v55 }
 0xce6   : > { %1953 = vpow2.f32 %v1392_v56 }
 0xcf0   : > { %v1954_v57 = vpop.eup %1953 }
 0xcf1   : > { %v1394_v58 = vsel %vm472_vm2, %v1954_v57, 0.0 }
 0xcf2   : > { %1395 = vadd.xlane.f32.xlu0 %v1394_v58 }
 0xd08   : > { %1401 = vrot.lane.b32.xlu0 %v1340_v34, %s2039_s26  ;;  %s316_s26 = sand.u32 1, %s2019_s28  }
 0xd09   : > { %s1599_s11 = sshll.u32 %s316_s26, 3  ;;  %s1509_s30 = scalar_lea.sflag [#allocation3], %s316_s26 }
 0xd0a   : > { %s318_s19 = scalar_lea.vmem [#allocation2], %s1599_s11  ;;  %s1961_s11 = sshll.u32 %s2040_s25, 4  ;;  %s1962_s11 = int_to_ptr.vmem [resolvable:$false] %s1961_s11 }
 0xd0b   : > { %s1523_s20 = sshll.u32 %s318_s19, 4  ;;  %s1963_s12 = scalar_lea.vmem %s1962_s11, 256  ;;  %s2388_s20 = int_to_ptr.vmem [resolvable:$true] %s1523_s20 }
 0xd0c   : > { %s1957_s24 = scalar_lea.vmem %s2388_s20, 128  ;;  %p1964_p1 = scmp.lt.s32.totalorder %s2388_s20, %s1962_s11 }
 0xd0d   : > { %p1958_p12 = scmp.ne.s32.totalorder %s2388_s20, %s1957_s24  ;;  %p1965_p2 = scmp.lt.s32.totalorder %s1963_s12, %s1957_s24 }
 0xd0f   : > { %p1959_p13 = pnand %p1958_p12, %p2126_p4  ;;  %p1966_p3 = por %p1965_p2, %p1964_p1 }
 0xd11   : > { %p1960_p0 = pneg %p1959_p13 }
 0xd13   : > { %p1967_p5 = pnand %p1966_p3, %p1960_p0 }
 0xd7f   : > { %v1396_v26 = vpop.xlane.xlu0 %1395 }
 0xd80   : > { %1955 = vrcp.f32 %v1396_v26 }
 0xd83   : > { %v1402_v59 = vpop.permute.xlu0 %1401 }
 0xd84   : > { %v1407_v60 = vsel %vm538_vm3, %v1402_v59, 0 }
 0xd85   : > { %1856 = vmatpush3.bf16.msra.mxu0 %v1407_v60 }
 0xd8a   : > { %v1956_v61 = vpop.eup %1955 }
 0xd8b   : > { %v1398_v62 = vmul.f32 %v1956_v61, %v1954_v57 }
 0xd8d   : > { %v1399_v63 = vpack.c.bf16 %v1398_v62, %v1398_v62 }
 0xd8f   : > { %1858 = vmatmul.mubr.msk.bf16.vlgmr.msra.gmra.mrb[36].mxu0 %vm472_vm2, %v1399_v63 }
 0xe62   : > { %v1443_v0 = vpop.f32.mrb[36].mxu0 }
 0xe63   : > { %v1449_v2 = vpack.c.bf16 %v1443_v0, %v1443_v0  ;;  %v1859_v3 = vpop.f32.mrb[37].mxu0 }
 0xe64   : > { %v1446_v5 = vpop.f32.mrb[38].mxu0 }
 0xe65   : > { %v1860_v7 = vpop.f32.mrb[39].mxu0  ;;  %1864 = vmatmul.mubr.msk.bf16.vlgmr.msra.gmra.mrb[36].mxu1 %vm472_vm2, %v1449_v2 }
 0xf38   : > { %v1492_v8 = vpop.f32.mrb[36].mxu1 }
 0xf39   : > { %v1498_v10 = vadd.f32 %v1492_v8, %v1208_v38  ;;  %v1865_v11 = vpop.f32.mrb[37].mxu1 }
 0xf3a   : > { %v1495_v12 = vpop.f32.mrb[38].mxu1 }
 0xf3b   : > { %v1506_v13 = vadd.f32 %v1678_v9, %v1498_v10  ;;  %v1866_v14 = vpop.f32.mrb[39].mxu1 }
 0xf3d   : > { %1507 = vst.msk [vmem:[%s318_s19] sm:$0xff] %vm360_vm1, %v1506_v13 }
 0xf3e   : > { %1970 = shalt.err (!%p1967_p5)
}
 0xf3f   : > { %s1971_s26 = scalar_lea.hbm %s2386_s23, 128  ;;  %s1975_s19 = scalar_lea.hbm %s2442_s8, 256 }
 0xf40   : > { %p1972_p6 = scmp.ne.s32.totalorder %s2386_s23, %s1971_s26  ;;  %p1976_p10 = scmp.lt.u32.totalorder %s2386_s23, %s2442_s8 }
 0xf41   : > { %p1977_p11 = scmp.lt.u32.totalorder %s1975_s19, %s1971_s26  ;;  %p1979_p13 = scmp.lt.u32.totalorder %s1971_s26, %s2386_s23 }
 0xf42   : > { %p1973_p7 = pnand %p1972_p6, %p2126_p4 }
 0xf43   : > { %p1978_p12 = por %p1977_p11, %p1976_p10 }
 0xf44   : > { %p1974_p9 = pneg %p1973_p7 }
 0xf45   : > { %p1980_p0 = por %p1979_p13, %p1978_p12 }
 0xf47   : > { %p1981_p1 = pnand %p1980_p0, %p1974_p9 }
 0xf49   : > { %1984 = shalt.err (!%p1981_p1)
}
 0xf4a   : > { %1867 = dma.vmem_to_hbm [thread:$0]  (%p2126_p4), %s2388_s20, 128, %s2386_s23, %s1509_s30  }
 0xf4b PF: > { %p1873_p2 = scmp.ge.s32.totalorder %s2035_s10, 2  ;;  %s1535_s24 = sand.u32 1, %s2015_s27  }
 0xf4c   : > { %s1536_s25 = scalar_lea.sflag [#allocation3], %s1535_s24 }
 0xf4d   : > { %p1870_p3 = pnand %p1873_p2, %p2133_p8 }
 0xf4f   : > { %2010 = dma.done.wait (!%p1870_p3), %s1536_s25, 128  }
 0xf50   : > { %2012 = vsyncadd (!%p1870_p3), %s1536_s25, 4294967168  ;;  %s21_s10 = sadd.s32 1, %s2035_s10   ;;  %s2445_s27 = smov %s2019_s28 }
 0xf51   : > { %p18_p5 = scmp.ge.s32.totalorder %s21_s10, 4   ;;  %s2446_s28 = smov %s2023_s29 }
 0xf52   : > { %s2447_s29 = smov %s2139_s18  ;;  %s2448_s30 = smov %s2031_s9 }
 0xf53   : > { %s2449_s9 = smov %s2451_s13  ;;  %20 = sbr.rel (!%p18_p5) target bundleno = 4 (0x4), region = 102 }
 0xf5a   :  { %1541 = vsyncpa [#allocation3], 1 }
 0xf5b   :  { %1543 = vsyncpa [#allocation3 + $0x1], 1 }

</bundles_post_ra>
